<compile_context>
chip_gen: v7x
topology: tpu7x:2x2x1
jax: 0.10.0
libtpu: 0.0.40
codegen_flags: <defaults>
</compile_context>

<pallas_src>
import jax
import jax.numpy as jnp
from jax import lax
from jax.experimental import pallas as pl
from jax.experimental.pallas import tpu as pltpu


def _lstm_kernel(x_ref, wih_ref, whh_ref, b_ref, wfc_ref, bfc_ref, y_ref):
    # x_ref:   (T*Bp, D)   time-major, batch padded to Bp=8 sublanes
    # wih_ref: (D, 4H)     W_ih^T
    # whh_ref: (H, 4H)     W_hh^T
    # b_ref:   (1, 4H)     b_ih + b_hh
    # wfc_ref: (H, 128)    zero-padded W_fc^T (lane-dense head)
    # bfc_ref: (1, 128)    zero-padded b_fc
    # y_ref:   (Bp, 128)   padded head output
    Bp = y_ref.shape[0]
    H = whh_ref.shape[0]
    G = whh_ref.shape[1]          # 4H
    TBp = x_ref.shape[0]
    T = TBp // Bp

    # ---- Hoisted input projection for ALL timesteps (one throughput matmul);
    #      result stays in vregs (no VMEM scratch round trip). ----------------
    xg = (jnp.dot(x_ref[...], wih_ref[...], preferred_element_type=jnp.float32)
          + b_ref[...])                                   # (T*Bp, 4H)

    whh = whh_ref[...]                                    # (H, 4H), resident

    # Lane mask: tanh for the cell-candidate gate lanes [2H, 3H), sigmoid
    # elsewhere.  Hoisted out of the loop.
    lane = lax.broadcasted_iota(jnp.int32, (Bp, G), 1)
    g_mask = (lane >= 2 * H) & (lane < 3 * H)

    h = jnp.zeros((Bp, H), jnp.float32)
    c = jnp.zeros((Bp, H), jnp.float32)

    # ---- Serial recurrence, fully unrolled with static (aligned) slices ----
    for t in range(T):
        x_gates = xg[t * Bp:(t + 1) * Bp, :]              # static, 8-sublane aligned
        gates = x_gates + jnp.dot(h, whh,
                                  preferred_element_type=jnp.float32)
        # Two full-vreg EUP passes + lane select (PyTorch gate order [i,f,g,o]).
        act = jnp.where(g_mask, jnp.tanh(gates), jax.nn.sigmoid(gates))
        i = act[:, 0 * H:1 * H]
        f = act[:, 1 * H:2 * H]
        g = act[:, 2 * H:3 * H]
        o = act[:, 3 * H:4 * H]
        c = f * c + i * g
        h = o * jnp.tanh(c)

    # ---- Fused, lane-dense FC head: (Bp, H) @ (H, 128) + (1, 128) ----------
    y_ref[...] = (jnp.dot(h, wfc_ref[...], preferred_element_type=jnp.float32)
                  + bfc_ref[...])


def lstm_model_forward(x, w_ih, w_hh, b_ih, b_hh, w_fc, b_fc):
    """x: (B, T, D) float32 (batch_first, like the PyTorch module).

    w_ih: (4H, D), w_hh: (4H, H), b_ih/b_hh: (4H,), w_fc: (n_out, H),
    b_fc: (n_out,).  Returns: (B, n_out) float32.
    """
    B, T, D = x.shape
    H = w_hh.shape[1]
    G = 4 * H
    n_out = w_fc.shape[0]

    Bp = max(8, ((B + 7) // 8) * 8)     # sublane-aligned batch tile
    OUT_PAD = 128                       # lane-dense padded head output

    # Time-major, batch padded to Bp sublanes, flattened to (T*Bp, D).
    x_tm = jnp.transpose(x, (1, 0, 2))                    # (T, B, D)
    x_tm = jnp.pad(x_tm, ((0, 0), (0, Bp - B), (0, 0)))   # (T, Bp, D)
    x_tm = x_tm.reshape(T * Bp, D)

    wih_t = jnp.transpose(w_ih)                           # (D, 4H)
    whh_t = jnp.transpose(w_hh)                           # (H, 4H)
    bias = (b_ih + b_hh).reshape(1, G)                    # (1, 4H)

    # Zero-padded FC head so the kernel output stays lane-dense (Bp, 128).
    wfc_pad = jnp.zeros((H, OUT_PAD), jnp.float32).at[:, :n_out].set(
        jnp.transpose(w_fc))
    bfc_pad = jnp.zeros((1, OUT_PAD), jnp.float32).at[:, :n_out].set(b_fc)

    y_pad = pl.pallas_call(
        _lstm_kernel,
        out_shape=jax.ShapeDtypeStruct((Bp, OUT_PAD), jnp.float32),
        grid_spec=pltpu.PrefetchScalarGridSpec(
            num_scalar_prefetch=0,
            grid=(1,),                                          # single step
            in_specs=[
                pl.BlockSpec((T * Bp, D), lambda i: (0, 0)),    # x (time-major)
                pl.BlockSpec((D, G), lambda i: (0, 0)),         # W_ih^T
                pl.BlockSpec((H, G), lambda i: (0, 0)),         # W_hh^T
                pl.BlockSpec((1, G), lambda i: (0, 0)),         # bias
                pl.BlockSpec((H, OUT_PAD), lambda i: (0, 0)),   # W_fc^T (padded)
                pl.BlockSpec((1, OUT_PAD), lambda i: (0, 0)),   # b_fc (padded)
            ],
            out_specs=pl.BlockSpec((Bp, OUT_PAD), lambda i: (0, 0)),
        ),
        compiler_params=pltpu.CompilerParams(
            dimension_semantics=("arbitrary",)),
    )(x_tm, wih_t, whh_t, bias, wfc_pad, bfc_pad)

    # Strip batch/lane padding.
    return y_pad[:B, :n_out]


def _reference_forward(x, w_ih, w_hh, b_ih, b_hh, w_fc, b_fc):
    """Pure-JAX reference matching torch.nn.LSTM + Linear semantics."""
    B, T, D = x.shape
    H = w_hh.shape[1]
    h0 = jnp.zeros((B, H), jnp.float32)
    c0 = jnp.zeros((B, H), jnp.float32)

    def step(carry, x_t):
        h, c = carry
        gates = x_t @ w_ih.T + b_ih + h @ w_hh.T + b_hh
        i = jax.nn.sigmoid(gates[:, 0 * H:1 * H])
        f = jax.nn.sigmoid(gates[:, 1 * H:2 * H])
        g = jnp.tanh(gates[:, 2 * H:3 * H])
        o = jax.nn.sigmoid(gates[:, 3 * H:4 * H])
        c_new = f * c + i * g
        h_new = o * jnp.tanh(c_new)
        return (h_new, c_new), h_new

    (h_last, _), _ = jax.lax.scan(step, (h0, c0), jnp.transpose(x, (1, 0, 2)))
    return h_last @ w_fc.T + b_fc


if __name__ == "__main__":
    B, T, D, H = 2, 8, 16, 32
    OUT = 2

    key = jax.random.PRNGKey(0)
    kx, k1, k2, k3, k4, k5, k6 = jax.random.split(key, 7)

    # PyTorch-style uniform(-1/sqrt(H), 1/sqrt(H)) init, deterministic.
    bound = 1.0 / jnp.sqrt(jnp.float32(H))
    w_ih = jax.random.uniform(k1, (4 * H, D), jnp.float32, -bound, bound)
    w_hh = jax.random.uniform(k2, (4 * H, H), jnp.float32, -bound, bound)
    b_ih = jax.random.uniform(k3, (4 * H,), jnp.float32, -bound, bound)
    b_hh = jax.random.uniform(k4, (4 * H,), jnp.float32, -bound, bound)
    w_fc = jax.random.uniform(k5, (OUT, H), jnp.float32, -bound, bound)
    b_fc = jax.random.uniform(k6, (OUT,), jnp.float32, -bound, bound)

    x = jax.random.normal(kx, (B, T, D), jnp.float32)

    y = lstm_model_forward(x, w_ih, w_hh, b_ih, b_hh, w_fc, b_fc)
    y = jax.block_until_ready(y)

    y_ref = _reference_forward(x, w_ih, w_hh, b_ih, b_hh, w_fc, b_fc)
    assert y.shape == (B, OUT)
    assert jnp.allclose(y, y_ref, atol=1e-4, rtol=1e-4), (y, y_ref)

    print("KERNEL_OK")
</pallas_src>

<mosaic_0001>
module attributes {stable_mosaic.version = 11 : i64} {
  func.func @_lstm_kernel(%arg0: i32, %arg1: memref<64x16xf32, #tpu.memory_space<vmem>>, %arg2: memref<16x128xf32, #tpu.memory_space<vmem>>, %arg3: memref<32x128xf32, #tpu.memory_space<vmem>>, %arg4: memref<1x128xf32, #tpu.memory_space<vmem>>, %arg5: memref<32x128xf32, #tpu.memory_space<vmem>>, %arg6: memref<1x128xf32, #tpu.memory_space<vmem>>, %arg7: memref<8x128xf32, #tpu.memory_space<vmem>>) attributes {dimension_semantics = [#tpu.dimension_semantics<arbitrary>], iteration_bounds = array<i64: 1>, scalar_prefetch = 0 : i64, scratch_operands = 0 : i64, tpu.core_type = #tpu.core_type<tc>, window_params = [{pipeline_mode = #tpu.pipeline_mode<synchronous>, transform_indices = @transform_0, window_bounds = array<i64: 64, 16>}, {pipeline_mode = #tpu.pipeline_mode<synchronous>, transform_indices = @transform_1, window_bounds = array<i64: 16, 128>}, {pipeline_mode = #tpu.pipeline_mode<synchronous>, transform_indices = @transform_2, window_bounds = array<i64: 32, 128>}, {pipeline_mode = #tpu.pipeline_mode<synchronous>, transform_indices = @transform_3, window_bounds = array<i64: 1, 128>}, {pipeline_mode = #tpu.pipeline_mode<synchronous>, transform_indices = @transform_4, window_bounds = array<i64: 32, 128>}, {pipeline_mode = #tpu.pipeline_mode<synchronous>, transform_indices = @transform_5, window_bounds = array<i64: 1, 128>}, {pipeline_mode = #tpu.pipeline_mode<synchronous>, transform_indices = @transform_6, window_bounds = array<i64: 8, 128>}]} {
    %c0 = arith.constant 0 : index
    %c0_0 = arith.constant 0 : index
    %0 = vector.load %arg1[%c0, %c0_0] : memref<64x16xf32, #tpu.memory_space<vmem>>, vector<64x16xf32>
    %c0_1 = arith.constant 0 : index
    %c0_2 = arith.constant 0 : index
    %1 = vector.load %arg2[%c0_1, %c0_2] : memref<16x128xf32, #tpu.memory_space<vmem>>, vector<16x128xf32>
    %cst = arith.constant dense<0.000000e+00> : vector<64x128xf32>
    %2 = tpu.matmul %0, %1, %cst {dimension_numbers = #tpu.dot_dimension_numbers<[1], [0], [0], [1], [0, 0, 1, 1], [], []>} : vector<64x16xf32>, vector<16x128xf32>, vector<64x128xf32> -> vector<64x128xf32>
    %c0_3 = arith.constant 0 : index
    %c0_4 = arith.constant 0 : index
    %3 = vector.load %arg4[%c0_3, %c0_4] : memref<1x128xf32, #tpu.memory_space<vmem>>, vector<1x128xf32>
    %4 = vector.broadcast %3 : vector<1x128xf32> to vector<64x128xf32>
    %5 = arith.addf %2, %4 : vector<64x128xf32>
    %c0_5 = arith.constant 0 : index
    %c0_6 = arith.constant 0 : index
    %6 = vector.load %arg3[%c0_5, %c0_6] : memref<32x128xf32, #tpu.memory_space<vmem>>, vector<32x128xf32>
    %7 = tpu.iota {dimensions = array<i32: 1>} : vector<8x128xi32>
    %c64_i32 = arith.constant 64 : i32
    %8 = vector.broadcast %c64_i32 : i32 to vector<8x128xi32>
    %9 = arith.cmpi sge, %7, %8 : vector<8x128xi32>
    %c96_i32 = arith.constant 96 : i32
    %10 = vector.broadcast %c96_i32 : i32 to vector<8x128xi32>
    %11 = arith.cmpi slt, %7, %10 : vector<8x128xi32>
    %12 = arith.andi %9, %11 : vector<8x128xi1>
    %cst_7 = arith.constant 0.000000e+00 : f32
    %13 = vector.broadcast %cst_7 : f32 to vector<8x32xf32>
    %cst_8 = arith.constant 0.000000e+00 : f32
    %14 = vector.broadcast %cst_8 : f32 to vector<8x32xf32>
    %15 = vector.extract_strided_slice %5 {offsets = [0, 0], sizes = [8, 128], strides = [1, 1]} : vector<64x128xf32> to vector<8x128xf32>
    %cst_9 = arith.constant dense<0.000000e+00> : vector<8x128xf32>
    %16 = tpu.matmul %13, %6, %cst_9 {dimension_numbers = #tpu.dot_dimension_numbers<[1], [0], [0], [1], [0, 0, 1, 1], [], []>} : vector<8x32xf32>, vector<32x128xf32>, vector<8x128xf32> -> vector<8x128xf32>
    %17 = arith.addf %15, %16 : vector<8x128xf32>
    %18 = math.tanh %17 : vector<8x128xf32>
    %19 = arith.negf %17 : vector<8x128xf32>
    %20 = math.exp %19 : vector<8x128xf32>
    %cst_10 = arith.constant 1.000000e+00 : f32
    %21 = vector.broadcast %cst_10 : f32 to vector<8x128xf32>
    %22 = arith.addf %21, %20 : vector<8x128xf32>
    %23 = arith.divf %21, %22 : vector<8x128xf32>
    %24 = arith.select %12, %18, %23 : vector<8x128xi1>, vector<8x128xf32>
    %25 = vector.extract_strided_slice %24 {offsets = [0, 0], sizes = [8, 32], strides = [1, 1]} : vector<8x128xf32> to vector<8x32xf32>
    %26 = vector.extract_strided_slice %24 {offsets = [0, 32], sizes = [8, 32], strides = [1, 1]} : vector<8x128xf32> to vector<8x32xf32>
    %27 = vector.extract_strided_slice %24 {offsets = [0, 64], sizes = [8, 32], strides = [1, 1]} : vector<8x128xf32> to vector<8x32xf32>
    %28 = vector.extract_strided_slice %24 {offsets = [0, 96], sizes = [8, 32], strides = [1, 1]} : vector<8x128xf32> to vector<8x32xf32>
    %29 = arith.mulf %26, %14 : vector<8x32xf32>
    %30 = arith.mulf %25, %27 : vector<8x32xf32>
    %31 = arith.addf %29, %30 : vector<8x32xf32>
    %32 = math.tanh %31 : vector<8x32xf32>
    %33 = arith.mulf %28, %32 : vector<8x32xf32>
    %34 = vector.extract_strided_slice %5 {offsets = [8, 0], sizes = [8, 128], strides = [1, 1]} : vector<64x128xf32> to vector<8x128xf32>
    %cst_11 = arith.constant dense<0.000000e+00> : vector<8x128xf32>
    %35 = tpu.matmul %33, %6, %cst_11 {dimension_numbers = #tpu.dot_dimension_numbers<[1], [0], [0], [1], [0, 0, 1, 1], [], []>} : vector<8x32xf32>, vector<32x128xf32>, vector<8x128xf32> -> vector<8x128xf32>
    %36 = arith.addf %34, %35 : vector<8x128xf32>
    %37 = math.tanh %36 : vector<8x128xf32>
    %38 = arith.negf %36 : vector<8x128xf32>
    %39 = math.exp %38 : vector<8x128xf32>
    %cst_12 = arith.constant 1.000000e+00 : f32
    %40 = vector.broadcast %cst_12 : f32 to vector<8x128xf32>
    %41 = arith.addf %40, %39 : vector<8x128xf32>
    %42 = arith.divf %40, %41 : vector<8x128xf32>
    %43 = arith.select %12, %37, %42 : vector<8x128xi1>, vector<8x128xf32>
    %44 = vector.extract_strided_slice %43 {offsets = [0, 0], sizes = [8, 32], strides = [1, 1]} : vector<8x128xf32> to vector<8x32xf32>
    %45 = vector.extract_strided_slice %43 {offsets = [0, 32], sizes = [8, 32], strides = [1, 1]} : vector<8x128xf32> to vector<8x32xf32>
    %46 = vector.extract_strided_slice %43 {offsets = [0, 64], sizes = [8, 32], strides = [1, 1]} : vector<8x128xf32> to vector<8x32xf32>
    %47 = vector.extract_strided_slice %43 {offsets = [0, 96], sizes = [8, 32], strides = [1, 1]} : vector<8x128xf32> to vector<8x32xf32>
    %48 = arith.mulf %45, %31 : vector<8x32xf32>
    %49 = arith.mulf %44, %46 : vector<8x32xf32>
    %50 = arith.addf %48, %49 : vector<8x32xf32>
    %51 = math.tanh %50 : vector<8x32xf32>
    %52 = arith.mulf %47, %51 : vector<8x32xf32>
    %53 = vector.extract_strided_slice %5 {offsets = [16, 0], sizes = [8, 128], strides = [1, 1]} : vector<64x128xf32> to vector<8x128xf32>
    %cst_13 = arith.constant dense<0.000000e+00> : vector<8x128xf32>
    %54 = tpu.matmul %52, %6, %cst_13 {dimension_numbers = #tpu.dot_dimension_numbers<[1], [0], [0], [1], [0, 0, 1, 1], [], []>} : vector<8x32xf32>, vector<32x128xf32>, vector<8x128xf32> -> vector<8x128xf32>
    %55 = arith.addf %53, %54 : vector<8x128xf32>
    %56 = math.tanh %55 : vector<8x128xf32>
    %57 = arith.negf %55 : vector<8x128xf32>
    %58 = math.exp %57 : vector<8x128xf32>
    %cst_14 = arith.constant 1.000000e+00 : f32
    %59 = vector.broadcast %cst_14 : f32 to vector<8x128xf32>
    %60 = arith.addf %59, %58 : vector<8x128xf32>
    %61 = arith.divf %59, %60 : vector<8x128xf32>
    %62 = arith.select %12, %56, %61 : vector<8x128xi1>, vector<8x128xf32>
    %63 = vector.extract_strided_slice %62 {offsets = [0, 0], sizes = [8, 32], strides = [1, 1]} : vector<8x128xf32> to vector<8x32xf32>
    %64 = vector.extract_strided_slice %62 {offsets = [0, 32], sizes = [8, 32], strides = [1, 1]} : vector<8x128xf32> to vector<8x32xf32>
    %65 = vector.extract_strided_slice %62 {offsets = [0, 64], sizes = [8, 32], strides = [1, 1]} : vector<8x128xf32> to vector<8x32xf32>
    %66 = vector.extract_strided_slice %62 {offsets = [0, 96], sizes = [8, 32], strides = [1, 1]} : vector<8x128xf32> to vector<8x32xf32>
    %67 = arith.mulf %64, %50 : vector<8x32xf32>
    %68 = arith.mulf %63, %65 : vector<8x32xf32>
    %69 = arith.addf %67, %68 : vector<8x32xf32>
    %70 = math.tanh %69 : vector<8x32xf32>
    %71 = arith.mulf %66, %70 : vector<8x32xf32>
    %72 = vector.extract_strided_slice %5 {offsets = [24, 0], sizes = [8, 128], strides = [1, 1]} : vector<64x128xf32> to vector<8x128xf32>
    %cst_15 = arith.constant dense<0.000000e+00> : vector<8x128xf32>
    %73 = tpu.matmul %71, %6, %cst_15 {dimension_numbers = #tpu.dot_dimension_numbers<[1], [0], [0], [1], [0, 0, 1, 1], [], []>} : vector<8x32xf32>, vector<32x128xf32>, vector<8x128xf32> -> vector<8x128xf32>
    %74 = arith.addf %72, %73 : vector<8x128xf32>
    %75 = math.tanh %74 : vector<8x128xf32>
    %76 = arith.negf %74 : vector<8x128xf32>
    %77 = math.exp %76 : vector<8x128xf32>
    %cst_16 = arith.constant 1.000000e+00 : f32
    %78 = vector.broadcast %cst_16 : f32 to vector<8x128xf32>
    %79 = arith.addf %78, %77 : vector<8x128xf32>
    %80 = arith.divf %78, %79 : vector<8x128xf32>
    %81 = arith.select %12, %75, %80 : vector<8x128xi1>, vector<8x128xf32>
    %82 = vector.extract_strided_slice %81 {offsets = [0, 0], sizes = [8, 32], strides = [1, 1]} : vector<8x128xf32> to vector<8x32xf32>
    %83 = vector.extract_strided_slice %81 {offsets = [0, 32], sizes = [8, 32], strides = [1, 1]} : vector<8x128xf32> to vector<8x32xf32>
    %84 = vector.extract_strided_slice %81 {offsets = [0, 64], sizes = [8, 32], strides = [1, 1]} : vector<8x128xf32> to vector<8x32xf32>
    %85 = vector.extract_strided_slice %81 {offsets = [0, 96], sizes = [8, 32], strides = [1, 1]} : vector<8x128xf32> to vector<8x32xf32>
    %86 = arith.mulf %83, %69 : vector<8x32xf32>
    %87 = arith.mulf %82, %84 : vector<8x32xf32>
    %88 = arith.addf %86, %87 : vector<8x32xf32>
    %89 = math.tanh %88 : vector<8x32xf32>
    %90 = arith.mulf %85, %89 : vector<8x32xf32>
    %91 = vector.extract_strided_slice %5 {offsets = [32, 0], sizes = [8, 128], strides = [1, 1]} : vector<64x128xf32> to vector<8x128xf32>
    %cst_17 = arith.constant dense<0.000000e+00> : vector<8x128xf32>
    %92 = tpu.matmul %90, %6, %cst_17 {dimension_numbers = #tpu.dot_dimension_numbers<[1], [0], [0], [1], [0, 0, 1, 1], [], []>} : vector<8x32xf32>, vector<32x128xf32>, vector<8x128xf32> -> vector<8x128xf32>
    %93 = arith.addf %91, %92 : vector<8x128xf32>
    %94 = math.tanh %93 : vector<8x128xf32>
    %95 = arith.negf %93 : vector<8x128xf32>
    %96 = math.exp %95 : vector<8x128xf32>
    %cst_18 = arith.constant 1.000000e+00 : f32
    %97 = vector.broadcast %cst_18 : f32 to vector<8x128xf32>
    %98 = arith.addf %97, %96 : vector<8x128xf32>
    %99 = arith.divf %97, %98 : vector<8x128xf32>
    %100 = arith.select %12, %94, %99 : vector<8x128xi1>, vector<8x128xf32>
    %101 = vector.extract_strided_slice %100 {offsets = [0, 0], sizes = [8, 32], strides = [1, 1]} : vector<8x128xf32> to vector<8x32xf32>
    %102 = vector.extract_strided_slice %100 {offsets = [0, 32], sizes = [8, 32], strides = [1, 1]} : vector<8x128xf32> to vector<8x32xf32>
    %103 = vector.extract_strided_slice %100 {offsets = [0, 64], sizes = [8, 32], strides = [1, 1]} : vector<8x128xf32> to vector<8x32xf32>
    %104 = vector.extract_strided_slice %100 {offsets = [0, 96], sizes = [8, 32], strides = [1, 1]} : vector<8x128xf32> to vector<8x32xf32>
    %105 = arith.mulf %102, %88 : vector<8x32xf32>
    %106 = arith.mulf %101, %103 : vector<8x32xf32>
    %107 = arith.addf %105, %106 : vector<8x32xf32>
    %108 = math.tanh %107 : vector<8x32xf32>
    %109 = arith.mulf %104, %108 : vector<8x32xf32>
    %110 = vector.extract_strided_slice %5 {offsets = [40, 0], sizes = [8, 128], strides = [1, 1]} : vector<64x128xf32> to vector<8x128xf32>
    %cst_19 = arith.constant dense<0.000000e+00> : vector<8x128xf32>
    %111 = tpu.matmul %109, %6, %cst_19 {dimension_numbers = #tpu.dot_dimension_numbers<[1], [0], [0], [1], [0, 0, 1, 1], [], []>} : vector<8x32xf32>, vector<32x128xf32>, vector<8x128xf32> -> vector<8x128xf32>
    %112 = arith.addf %110, %111 : vector<8x128xf32>
    %113 = math.tanh %112 : vector<8x128xf32>
    %114 = arith.negf %112 : vector<8x128xf32>
    %115 = math.exp %114 : vector<8x128xf32>
    %cst_20 = arith.constant 1.000000e+00 : f32
    %116 = vector.broadcast %cst_20 : f32 to vector<8x128xf32>
    %117 = arith.addf %116, %115 : vector<8x128xf32>
    %118 = arith.divf %116, %117 : vector<8x128xf32>
    %119 = arith.select %12, %113, %118 : vector<8x128xi1>, vector<8x128xf32>
    %120 = vector.extract_strided_slice %119 {offsets = [0, 0], sizes = [8, 32], strides = [1, 1]} : vector<8x128xf32> to vector<8x32xf32>
    %121 = vector.extract_strided_slice %119 {offsets = [0, 32], sizes = [8, 32], strides = [1, 1]} : vector<8x128xf32> to vector<8x32xf32>
    %122 = vector.extract_strided_slice %119 {offsets = [0, 64], sizes = [8, 32], strides = [1, 1]} : vector<8x128xf32> to vector<8x32xf32>
    %123 = vector.extract_strided_slice %119 {offsets = [0, 96], sizes = [8, 32], strides = [1, 1]} : vector<8x128xf32> to vector<8x32xf32>
    %124 = arith.mulf %121, %107 : vector<8x32xf32>
    %125 = arith.mulf %120, %122 : vector<8x32xf32>
    %126 = arith.addf %124, %125 : vector<8x32xf32>
    %127 = math.tanh %126 : vector<8x32xf32>
    %128 = arith.mulf %123, %127 : vector<8x32xf32>
    %129 = vector.extract_strided_slice %5 {offsets = [48, 0], sizes = [8, 128], strides = [1, 1]} : vector<64x128xf32> to vector<8x128xf32>
    %cst_21 = arith.constant dense<0.000000e+00> : vector<8x128xf32>
    %130 = tpu.matmul %128, %6, %cst_21 {dimension_numbers = #tpu.dot_dimension_numbers<[1], [0], [0], [1], [0, 0, 1, 1], [], []>} : vector<8x32xf32>, vector<32x128xf32>, vector<8x128xf32> -> vector<8x128xf32>
    %131 = arith.addf %129, %130 : vector<8x128xf32>
    %132 = math.tanh %131 : vector<8x128xf32>
    %133 = arith.negf %131 : vector<8x128xf32>
    %134 = math.exp %133 : vector<8x128xf32>
    %cst_22 = arith.constant 1.000000e+00 : f32
    %135 = vector.broadcast %cst_22 : f32 to vector<8x128xf32>
    %136 = arith.addf %135, %134 : vector<8x128xf32>
    %137 = arith.divf %135, %136 : vector<8x128xf32>
    %138 = arith.select %12, %132, %137 : vector<8x128xi1>, vector<8x128xf32>
    %139 = vector.extract_strided_slice %138 {offsets = [0, 0], sizes = [8, 32], strides = [1, 1]} : vector<8x128xf32> to vector<8x32xf32>
    %140 = vector.extract_strided_slice %138 {offsets = [0, 32], sizes = [8, 32], strides = [1, 1]} : vector<8x128xf32> to vector<8x32xf32>
    %141 = vector.extract_strided_slice %138 {offsets = [0, 64], sizes = [8, 32], strides = [1, 1]} : vector<8x128xf32> to vector<8x32xf32>
    %142 = vector.extract_strided_slice %138 {offsets = [0, 96], sizes = [8, 32], strides = [1, 1]} : vector<8x128xf32> to vector<8x32xf32>
    %143 = arith.mulf %140, %126 : vector<8x32xf32>
    %144 = arith.mulf %139, %141 : vector<8x32xf32>
    %145 = arith.addf %143, %144 : vector<8x32xf32>
    %146 = math.tanh %145 : vector<8x32xf32>
    %147 = arith.mulf %142, %146 : vector<8x32xf32>
    %148 = vector.extract_strided_slice %5 {offsets = [56, 0], sizes = [8, 128], strides = [1, 1]} : vector<64x128xf32> to vector<8x128xf32>
    %cst_23 = arith.constant dense<0.000000e+00> : vector<8x128xf32>
    %149 = tpu.matmul %147, %6, %cst_23 {dimension_numbers = #tpu.dot_dimension_numbers<[1], [0], [0], [1], [0, 0, 1, 1], [], []>} : vector<8x32xf32>, vector<32x128xf32>, vector<8x128xf32> -> vector<8x128xf32>
    %150 = arith.addf %148, %149 : vector<8x128xf32>
    %151 = math.tanh %150 : vector<8x128xf32>
    %152 = arith.negf %150 : vector<8x128xf32>
    %153 = math.exp %152 : vector<8x128xf32>
    %cst_24 = arith.constant 1.000000e+00 : f32
    %154 = vector.broadcast %cst_24 : f32 to vector<8x128xf32>
    %155 = arith.addf %154, %153 : vector<8x128xf32>
    %156 = arith.divf %154, %155 : vector<8x128xf32>
    %157 = arith.select %12, %151, %156 : vector<8x128xi1>, vector<8x128xf32>
    %158 = vector.extract_strided_slice %157 {offsets = [0, 0], sizes = [8, 32], strides = [1, 1]} : vector<8x128xf32> to vector<8x32xf32>
    %159 = vector.extract_strided_slice %157 {offsets = [0, 32], sizes = [8, 32], strides = [1, 1]} : vector<8x128xf32> to vector<8x32xf32>
    %160 = vector.extract_strided_slice %157 {offsets = [0, 64], sizes = [8, 32], strides = [1, 1]} : vector<8x128xf32> to vector<8x32xf32>
    %161 = vector.extract_strided_slice %157 {offsets = [0, 96], sizes = [8, 32], strides = [1, 1]} : vector<8x128xf32> to vector<8x32xf32>
    %162 = arith.mulf %159, %145 : vector<8x32xf32>
    %163 = arith.mulf %158, %160 : vector<8x32xf32>
    %164 = arith.addf %162, %163 : vector<8x32xf32>
    %165 = math.tanh %164 : vector<8x32xf32>
    %166 = arith.mulf %161, %165 : vector<8x32xf32>
    %c0_25 = arith.constant 0 : index
    %c0_26 = arith.constant 0 : index
    %167 = vector.load %arg5[%c0_25, %c0_26] : memref<32x128xf32, #tpu.memory_space<vmem>>, vector<32x128xf32>
    %cst_27 = arith.constant dense<0.000000e+00> : vector<8x128xf32>
    %168 = tpu.matmul %166, %167, %cst_27 {dimension_numbers = #tpu.dot_dimension_numbers<[1], [0], [0], [1], [0, 0, 1, 1], [], []>} : vector<8x32xf32>, vector<32x128xf32>, vector<8x128xf32> -> vector<8x128xf32>
    %c0_28 = arith.constant 0 : index
    %c0_29 = arith.constant 0 : index
    %169 = vector.load %arg6[%c0_28, %c0_29] : memref<1x128xf32, #tpu.memory_space<vmem>>, vector<1x128xf32>
    %170 = vector.broadcast %169 : vector<1x128xf32> to vector<8x128xf32>
    %171 = arith.addf %168, %170 : vector<8x128xf32>
    %c0_30 = arith.constant 0 : index
    %c0_31 = arith.constant 0 : index
    %172 = vector.load %arg7[%c0_30, %c0_31] : memref<8x128xf32, #tpu.memory_space<vmem>>, vector<8x128xf32>
    tpu.vector_store %arg7[%c0_30, %c0_31], %171 {strides = array<i32>} : memref<8x128xf32, #tpu.memory_space<vmem>>, vector<8x128xf32>,
    return
  }
  func.func @transform_0(%arg0: i32) -> (i32, i32) {
    %c0_i32 = arith.constant 0 : i32
    %c0_i32_0 = arith.constant 0 : i32
    %c0_i32_1 = arith.constant 0 : i32
    return %c0_i32, %c0_i32_0 : i32, i32
  }
  func.func @transform_1(%arg0: i32) -> (i32, i32) {
    %c0_i32 = arith.constant 0 : i32
    %c0_i32_0 = arith.constant 0 : i32
    %c0_i32_1 = arith.constant 0 : i32
    return %c0_i32, %c0_i32_0 : i32, i32
  }
  func.func @transform_2(%arg0: i32) -> (i32, i32) {
    %c0_i32 = arith.constant 0 : i32
    %c0_i32_0 = arith.constant 0 : i32
    %c0_i32_1 = arith.constant 0 : i32
    return %c0_i32, %c0_i32_0 : i32, i32
  }
  func.func @transform_3(%arg0: i32) -> (i32, i32) {
    %c0_i32 = arith.constant 0 : i32
    %c0_i32_0 = arith.constant 0 : i32
    %c0_i32_1 = arith.constant 0 : i32
    return %c0_i32, %c0_i32_0 : i32, i32
  }
  func.func @transform_4(%arg0: i32) -> (i32, i32) {
    %c0_i32 = arith.constant 0 : i32
    %c0_i32_0 = arith.constant 0 : i32
    %c0_i32_1 = arith.constant 0 : i32
    return %c0_i32, %c0_i32_0 : i32, i32
  }
  func.func @transform_5(%arg0: i32) -> (i32, i32) {
    %c0_i32 = arith.constant 0 : i32
    %c0_i32_0 = arith.constant 0 : i32
    %c0_i32_1 = arith.constant 0 : i32
    return %c0_i32, %c0_i32_0 : i32, i32
  }
  func.func @transform_6(%arg0: i32) -> (i32, i32) {
    %c0_i32 = arith.constant 0 : i32
    %c0_i32_0 = arith.constant 0 : i32
    %c0_i32_1 = arith.constant 0 : i32
    return %c0_i32, %c0_i32_0 : i32, i32
  }
}

</mosaic_0001>

<bundles_post_ra>
// kernel: tpu_custom_call.1
= control target key start
LH: loop header
LB: loop body
LE: loop exit
PB: predicated region body
PF: predicated region fallthrough
CT: control target
= control target key end

     0   :  { %vm41_vm0 = vcmask 130048   ;;  %v1436_v3 = vmov 0.0|0.0   ;;  %vm1437_vm1 = vmmov 0   ;;  %v1438_v10 = vmov 0.0   ;;  %s1696_s0 = inlined_call_operand.vmem [shape: f32[64,16], index: 0, kind: input, shape index: {}]   ;;  %s1697_s1 = inlined_call_operand.vmem [shape: f32[16,128], index: 1, kind: input, shape index: {}]   ;;  %s1698_s2 = inlined_call_operand.vmem [shape: f32[32,128], index: 2, kind: input, shape index: {}]   ;;  %s1699_s3 = inlined_call_operand.vmem [shape: f32[1,128], index: 3, kind: input, shape index: {}]   ;;  %s1700_s4 = inlined_call_operand.vmem [shape: f32[32,128], index: 4, kind: input, shape index: {}]   ;;  %s1701_s5 = inlined_call_operand.vmem [shape: f32[1,128], index: 5, kind: input, shape index: {}]   ;;  %s1702_s6 = inlined_call_operand.hbm [shape: f32[8,128], index: 6, kind: output, shape index: {}]  }
   0x1   :  { %v32_v0 = vld [vmem:[%s1697_s1] sm:$0xff]  ;;  %v33_v1 = vld [vmem:[%s1697_s1 + $0x8] sm:$0xff]  ;;  %1288 = vmatprep.subr.bf16.mxu1 %v1436_v3  ;;  %v173_v8 = vld [vmem:[%s1698_s2 + $0x10] sm:$0xff]  ;;  %1193 = vmatprep.mubr.msk.f32.mxu1 %vm1437_vm1, %v1438_v10 }
   0x2   :  { %v171_v2 = vld [vmem:[%s1698_s2] sm:$0xff]  ;;  %v1284_v4 = vpack.c.bf16 %v33_v1, %v32_v0  ;;  %v172_v5 = vld [vmem:[%s1698_s2 + $0x8] sm:$0xff]  ;;  %v174_v9 = vld [vmem:[%s1698_s2 + $0x18] sm:$0xff] }
   0x3   :  { %v24_v6 = vld [vmem:[%s1696_s0] sm:$0xff]  ;;  %v1493_v7 = vpack.c.bf16 %v172_v5, %v171_v2 }
   0x4   :  { %1173 = vmatprep.mubr.msk.f32.mxu0 %vm41_vm0, %v24_v6 }
   0x5   :  { %11 = vsyncpa [#allocation3], 0  ;;  %1285 = vmatprep.subr.bf16.mxu0 %v1284_v4  ;;  %1290 = vmatpush3.bf16.msra.mxu1 %v1493_v7  ;;  %v25_v11 = vld [vmem:[%s1696_s0 + $0x8] sm:$0xff]  ;;  %v1508_v12 = vpack.c.bf16 %v174_v9, %v173_v8  ;;  %v1529_v13 = vld [vmem:[%s1699_s3] ss:$0 sm:$0xff]  ;;  %v175_v22 = vlaneseq  ;;  %s1439_s3 = smov 64  }
   0x6   :  { %1287 = vmatpush3.bf16.msra.mxu0 %v1284_v4  ;;  %1291 = vmatprep.subr.bf16.mxu1 %v1436_v3  ;;  %s1440_s13 = smov 32   ;;  %vm180_vm5 = vcmask 261120   ;;  %v26_v53 = vld [vmem:[%s1696_s0 + $0x10] sm:$0xff]  ;;  %v27_v54 = vld [vmem:[%s1696_s0 + $0x18] sm:$0xff]  ;;  %v28_v55 = vld [vmem:[%s1696_s0 + $0x20] sm:$0xff] }
   0x7   :  { %1300 = vmatprep.subr.bf16.mxu0 %v1436_v3  ;;  %v176_v24 = vand.u32 127, %v175_v22  ;;  %v29_v56 = vld [vmem:[%s1696_s0 + $0x28] sm:$0xff]  ;;  %v30_v57 = vld [vmem:[%s1696_s0 + $0x30] sm:$0xff]  ;;  %v31_v58 = vld [vmem:[%s1696_s0 + $0x38] sm:$0xff] }
   0x8   :  { %v989_v25 = vld [vmem:[%s1700_s4 + $0x10] sm:$0xff] }
   0x9   :  { %1174 = vmatmul.mubr.msk.f32.vlgmr.msra.gmra.mrb[0].mxu0 %vm41_vm0, %v25_v11  ;;  %1293 = vmatpush3.bf16.msra.mxu1 %v1508_v12  ;;  %vm177_vm2 = vcmp.ge.s32.totalorder %v176_v24, 64  ;;  %vm178_vm3 = vcmp.lt.s32.totalorder %v176_v24, 96 }
   0xa   :  { %1302 = vmatpush3.bf16.msra.mxu0 %v1493_v7  ;;  %1294 = vmatprep.subr.bf16.mxu1 %v1436_v3  ;;  %vm1532_vm4 = vmand %vm177_vm2, %vm178_vm3 }
   0xb   :  { %1303 = vmatprep.subr.bf16.mxu0 %v1436_v3  ;;  %1176 = vmatprep.mubr.msk.f32.mxu0 %vm41_vm0, %v26_v53 }
   0xc   :  { %1194 = vmatmul.mubr.f32.vlgmr.msra.gmra.mrb[0].mxu1 %v1438_v10 }
   0xd   :  { %1296 = vmatpush3.bf16.msra.mxu1 %v1493_v7  ;;  %1204 = vmatprep.mubr.msk.f32.mxu1 %vm1437_vm1, %v1438_v10 }
   0xe   :  { %1297 = vmatprep.subr.bf16.mxu1 %v1436_v3  ;;  %1305 = vmatpush3.bf16.msra.mxu0 %v1508_v12 }
   0xf   :  { %1312 = vmatprep.subr.bf16.mxu0 %v1436_v3  ;;  %1177 = vmatmul.mubr.msk.f32.gmra.mrb[2].mxu0 %vm41_vm0, %v27_v54 }
  0x10   :  { %1179 = vmatprep.mubr.msk.f32.mxu0 %vm41_vm0, %v28_v55 }
  0x11   :  { %1299 = vmatpush3.bf16.msra.mxu1 %v1508_v12 }
  0x12   :  { %1306 = vmatprep.subr.bf16.mxu1 %v1436_v3 }
  0x13   :  { %1180 = vmatmul.mubr.msk.f32.gmra.mrb[4].mxu0 %vm41_vm0, %v29_v56 }
  0x14   :  { %1182 = vmatprep.mubr.msk.f32.mxu0 %vm41_vm0, %v30_v57 }
  0x17   :  { %1183 = vmatmul.mubr.msk.f32.gmra.mrb[6].mxu0 %vm41_vm0, %v31_v58 }
  0x18   :  { %1215 = vmatprep.mubr.msk.f32.mxu0 %vm1437_vm1, %v1438_v10 }
  0xdc   :  { %v1175_v14 = vpop.f32.mrb[0].mxu0 }
  0xdd   :  { %v132_v15 = vpop.f32.mrb[1].mxu0  ;;  %v138_v38 = vadd.f32 %v1175_v14, %v1529_v13 }
  0xde   :  { %v133_v16 = vadd.f32 %v1529_v13, %v132_v15 }
  0xdf   :  { %v250_v17 = vpop.f32.mrb[0].mxu1 }
  0xe0   :  { %v254_v18 = vadd.f32 %v250_v17, %v133_v16  ;;  %v1195_v19 = vpop.f32.mrb[1].mxu1 }
  0xe2   :  { %v1097_v20 = vmul.f32 -1.442695, %v254_v18  ;;  %v1178_v62 = vpop.f32.mrb[2].mxu0 }
  0xe3   :  { %v142_v63 = vpop.f32.mrb[3].mxu0 }
  0xe4   :  { %1348 = vpow2.f32 %v1097_v20  ;;  %v143_v6 = vadd.f32 %v1529_v13, %v142_v63 }
  0xe5   :  { %1350 = vtanh.f32 %v254_v18 }
  0xe6   :  { %v1582_v0 = vpop.f32.mrb[4].mxu0 }
  0xe7   :  { %v1584_v1 = vpop.f32.mrb[5].mxu0 }
  0xea   :  { %v1586_v2 = vpop.f32.mrb[6].mxu0 }
  0xeb   :  { %v1588_v4 = vpop.f32.mrb[7].mxu0 }
  0xee   :  { %v1349_v21 = vpop.eup %1348 }
  0xef   :  { %v259_v23 = vadd.f32 1.0, %v1349_v21  ;;  %v1351_v26 = vpop.eup %1350 }
  0xf1   :  { %1352 = vrcp.f32 %v259_v23 }
  0xfb   :  { %v1353_v27 = vpop.eup %1352 }
  0xfc   :  { %v262_v28 = vsel %vm1532_vm4, %v1351_v26, %v1353_v27 }
  0xfd   :  { %265 = vrot.lane.b32.xlu0 %v262_v28, %s1439_s3  ;;  %v263_v31 = vmul.f32 0.0, %v262_v28 }
 0x16f   :  { %v266_v29 = vpop.permute.xlu0 %265 }
 0x170   :  { %v268_v30 = vmul.f32 %v266_v29, %v262_v28 }
 0x172   :  { %270 = vrot.lane.b32.xlu0 %v268_v30, %s1440_s13  ;;  %v148_v30 = vadd.f32 %v1178_v62, %v1529_v13 }
 0x1e4   :  { %v271_v32 = vpop.permute.xlu0 %270 }
 0x1e5   :  { %v273_v33 = vadd.f32 %v271_v32, %v263_v31 }
 0x1e7   :  { %1354 = vtanh.f32 %v273_v33 }
 0x1f1   :  { %v1355_v34 = vpop.eup %1354 }
 0x1f2   :  { %276 = vrot.lane.b32.xlu1 %v1355_v34, %s1439_s3 }
 0x264   :  { %v277_v35 = vpop.permute.xlu1 %276 }
 0x265   :  { %v279_v36 = vmul.f32 %v277_v35, %v262_v28 }
 0x267   :  { %281 = vrot.lane.b32.xlu1 %v279_v36, %s1440_s13 }
 0x2d9   :  { %v282_v37 = vpop.permute.xlu1 %281 }
 0x2da   :  { %1205 = vmatmul.mubr.msk.f32.vlgmr.msra.gmra.mrb[2].mxu1 %vm180_vm5, %v282_v37 }
 0x2db   :  { %1308 = vmatpush3.bf16.msra.mxu1 %v1493_v7  ;;  %1226 = vmatprep.mubr.msk.f32.mxu1 %vm1437_vm1, %v1438_v10 }
 0x2dc   :  { %1309 = vmatprep.subr.bf16.mxu1 %v1436_v3 }
 0x2df   :  { %1311 = vmatpush3.bf16.msra.mxu1 %v1508_v12 }
 0x2e0   :  { %1318 = vmatprep.subr.bf16.mxu1 %v1436_v3 }
 0x3ad   :  { %v351_v39 = vpop.f32.mrb[2].mxu1 }
 0x3ae   :  { %v355_v40 = vadd.f32 %v351_v39, %v138_v38  ;;  %v1206_v41 = vpop.f32.mrb[3].mxu1 }
 0x3b0   :  { %v1099_v42 = vmul.f32 -1.442695, %v355_v40 }
 0x3b2   :  { %1356 = vpow2.f32 %v1099_v42 }
 0x3b3   :  { %1358 = vtanh.f32 %v355_v40 }
 0x3bc   :  { %v1357_v43 = vpop.eup %1356 }
 0x3bd   :  { %v360_v44 = vadd.f32 1.0, %v1357_v43  ;;  %v1359_v45 = vpop.eup %1358 }
 0x3bf   :  { %1360 = vrcp.f32 %v360_v44 }
 0x3c9   :  { %v1361_v46 = vpop.eup %1360 }
 0x3ca   :  { %v363_v47 = vsel %vm1532_vm4, %v1359_v45, %v1361_v46 }
 0x3cb   :  { %366 = vrot.lane.b32.xlu0 %v363_v47, %s1439_s3  ;;  %v364_v50 = vmul.f32 %v363_v47, %v273_v33 }
 0x43d   :  { %v367_v48 = vpop.permute.xlu0 %366 }
 0x43e   :  { %v369_v49 = vmul.f32 %v367_v48, %v363_v47 }
 0x440   :  { %371 = vrot.lane.b32.xlu1 %v369_v49, %s1440_s13  ;;  %v153_v49 = vadd.f32 %v1529_v13, %v1584_v1 }
 0x4b2   :  { %v372_v51 = vpop.permute.xlu1 %371 }
 0x4b3   :  { %v374_v52 = vadd.f32 %v372_v51, %v364_v50 }
 0x4b5   :  { %1362 = vtanh.f32 %v374_v52 }
 0x4bf   :  { %v1363_v59 = vpop.eup %1362 }
 0x4c0   :  { %377 = vrot.lane.b32.xlu0 %v1363_v59, %s1439_s3 }
 0x532   :  { %v378_v60 = vpop.permute.xlu0 %377 }
 0x533   :  { %v380_v61 = vmul.f32 %v378_v60, %v363_v47 }
 0x535   :  { %382 = vrot.lane.b32.xlu1 %v380_v61, %s1440_s13 }
 0x5a7   :  { %v383_v5 = vpop.permute.xlu1 %382 }
 0x5a8   :  { %1216 = vmatmul.mubr.msk.f32.vlgmr.msra.gmra.mrb[8].mxu0 %vm180_vm5, %v383_v5 }
 0x5a9   :  { %1314 = vmatpush3.bf16.msra.mxu0 %v1493_v7  ;;  %1237 = vmatprep.mubr.msk.f32.mxu0 %vm1437_vm1, %v1438_v10 }
 0x5aa   :  { %1315 = vmatprep.subr.bf16.mxu0 %v1436_v3 }
 0x5ad   :  { %1317 = vmatpush3.bf16.msra.mxu0 %v1508_v12 }
 0x5ae   :  { %1324 = vmatprep.subr.bf16.mxu0 %v1436_v3 }
 0x67b   :  { %v452_v8 = vpop.f32.mrb[8].mxu0 }
 0x67c   :  { %v456_v9 = vadd.f32 %v452_v8, %v143_v6  ;;  %v1217_v11 = vpop.f32.mrb[9].mxu0 }
 0x67e   :  { %v1101_v14 = vmul.f32 -1.442695, %v456_v9 }
 0x680   :  { %1364 = vpow2.f32 %v1101_v14 }
 0x681   :  { %1366 = vtanh.f32 %v456_v9  ;;  %v158_v9 = vadd.f32 %v1582_v0, %v1529_v13 }
 0x68a   :  { %v1365_v15 = vpop.eup %1364 }
 0x68b   :  { %v461_v16 = vadd.f32 1.0, %v1365_v15  ;;  %v1367_v17 = vpop.eup %1366 }
 0x68d   :  { %1368 = vrcp.f32 %v461_v16 }
 0x697   :  { %v1369_v18 = vpop.eup %1368 }
 0x698   :  { %v464_v19 = vsel %vm1532_vm4, %v1367_v17, %v1369_v18 }
 0x699   :  { %467 = vrot.lane.b32.xlu0 %v464_v19, %s1439_s3  ;;  %v465_v22 = vmul.f32 %v464_v19, %v374_v52 }
 0x70b   :  { %v468_v20 = vpop.permute.xlu0 %467 }
 0x70c   :  { %v470_v21 = vmul.f32 %v468_v20, %v464_v19 }
 0x70e   :  { %472 = vrot.lane.b32.xlu1 %v470_v21, %s1440_s13 }
 0x780   :  { %v473_v23 = vpop.permute.xlu1 %472 }
 0x781   :  { %v475_v24 = vadd.f32 %v473_v23, %v465_v22 }
 0x783   :  { %1370 = vtanh.f32 %v475_v24 }
 0x78d   :  { %v1371_v26 = vpop.eup %1370 }
 0x78e   :  { %478 = vrot.lane.b32.xlu0 %v1371_v26, %s1439_s3 }
 0x800   :  { %v479_v27 = vpop.permute.xlu0 %478 }
 0x801   :  { %v481_v28 = vmul.f32 %v479_v27, %v464_v19 }
 0x803   :  { %483 = vrot.lane.b32.xlu1 %v481_v28, %s1440_s13 }
 0x875   :  { %v484_v29 = vpop.permute.xlu1 %483 }
 0x876   :  { %1227 = vmatmul.mubr.msk.f32.vlgmr.msra.gmra.mrb[4].mxu1 %vm180_vm5, %v484_v29  ;;  %v163_v29 = vadd.f32 %v1529_v13, %v1588_v4 }
 0x877   :  { %1320 = vmatpush3.bf16.msra.mxu1 %v1493_v7  ;;  %1248 = vmatprep.mubr.msk.f32.mxu1 %vm1437_vm1, %v1438_v10 }
 0x878   :  { %1321 = vmatprep.subr.bf16.mxu1 %v1436_v3 }
 0x87b   :  { %1323 = vmatpush3.bf16.msra.mxu1 %v1508_v12 }
 0x87c   :  { %1330 = vmatprep.subr.bf16.mxu1 %v1436_v3 }
 0x949   :  { %v553_v31 = vpop.f32.mrb[4].mxu1 }
 0x94a   :  { %v557_v32 = vadd.f32 %v553_v31, %v148_v30  ;;  %v1228_v33 = vpop.f32.mrb[5].mxu1 }
 0x94c   :  { %v1103_v34 = vmul.f32 -1.442695, %v557_v32 }
 0x94e   :  { %1372 = vpow2.f32 %v1103_v34 }
 0x94f   :  { %1374 = vtanh.f32 %v557_v32 }
 0x958   :  { %v1373_v35 = vpop.eup %1372 }
 0x959   :  { %v562_v36 = vadd.f32 1.0, %v1373_v35  ;;  %v1375_v37 = vpop.eup %1374 }
 0x95b   :  { %1376 = vrcp.f32 %v562_v36 }
 0x965   :  { %v1377_v38 = vpop.eup %1376 }
 0x966   :  { %v565_v39 = vsel %vm1532_vm4, %v1375_v37, %v1377_v38 }
 0x967   :  { %568 = vrot.lane.b32.xlu0 %v565_v39, %s1439_s3  ;;  %v566_v42 = vmul.f32 %v565_v39, %v475_v24 }
 0x9d9   :  { %v569_v40 = vpop.permute.xlu0 %568 }
 0x9da   :  { %v571_v41 = vmul.f32 %v569_v40, %v565_v39 }
 0x9dc   :  { %573 = vrot.lane.b32.xlu1 %v571_v41, %s1440_s13 }
 0xa4e   :  { %v574_v43 = vpop.permute.xlu1 %573 }
 0xa4f   :  { %v576_v44 = vadd.f32 %v574_v43, %v566_v42 }
 0xa51   :  { %1378 = vtanh.f32 %v576_v44 }
 0xa5b   :  { %v1379_v45 = vpop.eup %1378 }
 0xa5c   :  { %579 = vrot.lane.b32.xlu0 %v1379_v45, %s1439_s3 }
 0xace   :  { %v580_v46 = vpop.permute.xlu0 %579 }
 0xacf   :  { %v582_v47 = vmul.f32 %v580_v46, %v565_v39  ;;  %v168_v46 = vadd.f32 %v1586_v2, %v1529_v13 }
 0xad1   :  { %584 = vrot.lane.b32.xlu1 %v582_v47, %s1440_s13 }
 0xb43   :  { %v585_v48 = vpop.permute.xlu1 %584 }
 0xb44   :  { %1238 = vmatmul.mubr.msk.f32.vlgmr.msra.gmra.mrb[10].mxu0 %vm180_vm5, %v585_v48 }
 0xb45   :  { %1326 = vmatpush3.bf16.msra.mxu0 %v1493_v7  ;;  %1259 = vmatprep.mubr.msk.f32.mxu0 %vm1437_vm1, %v1438_v10 }
 0xb46   :  { %1327 = vmatprep.subr.bf16.mxu0 %v1436_v3 }
 0xb49   :  { %1329 = vmatpush3.bf16.msra.mxu0 %v1508_v12 }
 0xb4a   :  { %1336 = vmatprep.subr.bf16.mxu0 %v1436_v3 }
 0xc17   :  { %v654_v50 = vpop.f32.mrb[10].mxu0 }
 0xc18   :  { %v658_v51 = vadd.f32 %v654_v50, %v153_v49  ;;  %v1239_v52 = vpop.f32.mrb[11].mxu0 }
 0xc1a   :  { %v1105_v53 = vmul.f32 -1.442695, %v658_v51 }
 0xc1c   :  { %1380 = vpow2.f32 %v1105_v53 }
 0xc1d   :  { %1382 = vtanh.f32 %v658_v51 }
 0xc26   :  { %v1381_v54 = vpop.eup %1380 }
 0xc27   :  { %v663_v55 = vadd.f32 1.0, %v1381_v54  ;;  %v1383_v56 = vpop.eup %1382 }
 0xc29   :  { %1384 = vrcp.f32 %v663_v55 }
 0xc33   :  { %v1385_v57 = vpop.eup %1384 }
 0xc34   :  { %v666_v58 = vsel %vm1532_vm4, %v1383_v56, %v1385_v57 }
 0xc35   :  { %669 = vrot.lane.b32.xlu0 %v666_v58, %s1439_s3  ;;  %v667_v61 = vmul.f32 %v666_v58, %v576_v44 }
 0xca7   :  { %v670_v59 = vpop.permute.xlu0 %669 }
 0xca8   :  { %v672_v60 = vmul.f32 %v670_v59, %v666_v58  ;;  %v987_v59 = vld [vmem:[%s1700_s4] sm:$0xff] }
 0xcaa   :  { %674 = vrot.lane.b32.xlu1 %v672_v60, %s1440_s13  ;;  %v988_v60 = vld [vmem:[%s1700_s4 + $0x8] sm:$0xff] }
 0xd1c   :  { %v675_v62 = vpop.permute.xlu1 %674 }
 0xd1d   :  { %v677_v63 = vadd.f32 %v675_v62, %v667_v61  ;;  %v1337_v61 = vpack.c.bf16 %v988_v60, %v987_v59  ;;  %v990_v62 = vld [vmem:[%s1700_s4 + $0x18] sm:$0xff]  ;;  %s1441_s4 = smov [#allocation2]  }
 0xd1e   :  { %s1080_s10 = sshll.u32 %s1441_s4, 4  ;;  %s1081_s10 = int_to_ptr.vmem [resolvable:$true] %s1080_s10 }
 0xd1f   :  { %1386 = vtanh.f32 %v677_v63  ;;  %s1412_s11 = scalar_lea.vmem %s1081_s10, 128  ;;  %p1417_p1 = scmp.lt.s32.totalorder %s1081_s10, %s1081_s10 }
 0xd20   :  { %p1413_p0 = scmp.ne.s32.totalorder %s1081_s10, %s1412_s11  ;;  %p1418_p2 = scmp.lt.s32.totalorder %s1412_s11, %s1412_s11 }
 0xd22   :  { %p1419_p3 = por %p1418_p2, %p1417_p1 }
 0xd24   :  { %p1420_p4 = pnand %p1419_p3, %p1413_p0 }
 0xd29   :  { %v1387_v1 = vpop.eup %1386 }
 0xd2a   :  { %680 = vrot.lane.b32.xlu0 %v1387_v1, %s1439_s3 }
 0xd9c   :  { %v681_v5 = vpop.permute.xlu0 %680 }
 0xd9d   :  { %v683_v6 = vmul.f32 %v681_v5, %v666_v58 }
 0xd9f   :  { %685 = vrot.lane.b32.xlu1 %v683_v6, %s1440_s13 }
 0xe11   :  { %v686_v8 = vpop.permute.xlu1 %685 }
 0xe12   :  { %1249 = vmatmul.mubr.msk.f32.vlgmr.msra.gmra.mrb[6].mxu1 %vm180_vm5, %v686_v8 }
 0xe13   :  { %1332 = vmatpush3.bf16.msra.mxu1 %v1493_v7  ;;  %1270 = vmatprep.mubr.msk.f32.mxu1 %vm1437_vm1, %v1438_v10 }
 0xe14   :  { %1333 = vmatprep.subr.bf16.mxu1 %v1436_v3 }
 0xe17   :  { %1335 = vmatpush3.bf16.msra.mxu1 %v1508_v12 }
 0xee5   :  { %v755_v11 = vpop.f32.mrb[6].mxu1 }
 0xee6   :  { %v759_v14 = vadd.f32 %v755_v11, %v158_v9  ;;  %v1250_v15 = vpop.f32.mrb[7].mxu1  ;;  %v1112_v9 = vld [vmem:[%s1701_s5] ss:$0 sm:$0xff] }
 0xee8   :  { %v1107_v16 = vmul.f32 -1.442695, %v759_v14 }
 0xeea   :  { %1388 = vpow2.f32 %v1107_v16 }
 0xeeb   :  { %1390 = vtanh.f32 %v759_v14 }
 0xef4   :  { %v1389_v17 = vpop.eup %1388 }
 0xef5   :  { %v764_v18 = vadd.f32 1.0, %v1389_v17  ;;  %v1391_v7 = vpop.eup %1390 }
 0xef7   :  { %1392 = vrcp.f32 %v764_v18 }
 0xf01   :  { %v1393_v19 = vpop.eup %1392 }
 0xf02   :  { %v767_v20 = vsel %vm1532_vm4, %v1391_v7, %v1393_v19 }
 0xf03   :  { %770 = vrot.lane.b32.xlu0 %v767_v20, %s1439_s3  ;;  %v768_v0 = vmul.f32 %v767_v20, %v677_v63  ;;  %v1340_v63 = vpack.c.bf16 %v990_v62, %v989_v25 }
 0xf75   :  { %v771_v12 = vpop.permute.xlu0 %770 }
 0xf76   :  { %v773_v21 = vmul.f32 %v771_v12, %v767_v20 }
 0xf78   :  { %775 = vrot.lane.b32.xlu1 %v773_v21, %s1440_s13 }
 0xfea   :  { %v776_v22 = vpop.permute.xlu1 %775 }
 0xfeb   :  { %v778_v23 = vadd.f32 %v776_v22, %v768_v0 }
 0xfed   :  { %1394 = vtanh.f32 %v778_v23 }
 0xff7   :  { %v1395_v24 = vpop.eup %1394 }
 0xff8   :  { %781 = vrot.lane.b32.xlu0 %v1395_v24, %s1439_s3 }
0x106a   :  { %v782_v26 = vpop.permute.xlu0 %781 }
0x106b   :  { %v784_v27 = vmul.f32 %v782_v26, %v767_v20 }
0x106d   :  { %786 = vrot.lane.b32.xlu1 %v784_v27, %s1440_s13 }
0x10df   :  { %v787_v28 = vpop.permute.xlu1 %786 }
0x10e0   :  { %1260 = vmatmul.mubr.msk.f32.vlgmr.msra.gmra.mrb[12].mxu0 %vm180_vm5, %v787_v28 }
0x10e1   :  { %1281 = vmatprep.mubr.msk.f32.mxu0 %vm1437_vm1, %v1438_v10  ;;  %1338 = vmatpush3.bf16.msra.mxu0 %v1337_v61 }
0x10e2   :  { %1339 = vmatprep.subr.bf16.mxu0 %v1436_v3 }
0x10e5   :  { %1341 = vmatpush3.bf16.msra.mxu0 %v1340_v63 }
0x11b3   :  { %v856_v30 = vpop.f32.mrb[12].mxu0 }
0x11b4   :  { %v860_v31 = vadd.f32 %v856_v30, %v163_v29  ;;  %v1261_v32 = vpop.f32.mrb[13].mxu0 }
0x11b6   :  { %v1109_v33 = vmul.f32 -1.442695, %v860_v31 }
0x11b8   :  { %1396 = vpow2.f32 %v1109_v33 }
0x11b9   :  { %1398 = vtanh.f32 %v860_v31 }
0x11c2   :  { %v1397_v34 = vpop.eup %1396 }
0x11c3   :  { %v865_v35 = vadd.f32 1.0, %v1397_v34  ;;  %v1399_v36 = vpop.eup %1398 }
0x11c5   :  { %1400 = vrcp.f32 %v865_v35 }
0x11cf   :  { %v1401_v37 = vpop.eup %1400 }
0x11d0   :  { %v868_v38 = vsel %vm1532_vm4, %v1399_v36, %v1401_v37 }
0x11d1   :  { %871 = vrot.lane.b32.xlu0 %v868_v38, %s1439_s3  ;;  %v869_v4 = vmul.f32 %v868_v38, %v778_v23 }
0x1243   :  { %v872_v10 = vpop.permute.xlu0 %871 }
0x1244   :  { %v874_v39 = vmul.f32 %v872_v10, %v868_v38 }
0x1246   :  { %876 = vrot.lane.b32.xlu1 %v874_v39, %s1440_s13 }
0x12b8   :  { %v877_v40 = vpop.permute.xlu1 %876 }
0x12b9   :  { %v879_v41 = vadd.f32 %v877_v40, %v869_v4 }
0x12bb   :  { %1402 = vtanh.f32 %v879_v41 }
0x12c5   :  { %v1403_v42 = vpop.eup %1402 }
0x12c6   :  { %882 = vrot.lane.b32.xlu0 %v1403_v42, %s1439_s3 }
0x1338   :  { %v883_v43 = vpop.permute.xlu0 %882 }
0x1339   :  { %v885_v44 = vmul.f32 %v883_v43, %v868_v38 }
0x133b   :  { %887 = vrot.lane.b32.xlu1 %v885_v44, %s1440_s13 }
0x13ad   :  { %v888_v45 = vpop.permute.xlu1 %887 }
0x13ae   :  { %1271 = vmatmul.mubr.msk.f32.vlgmr.msra.gmra.mrb[8].mxu1 %vm180_vm5, %v888_v45 }
0x1481   :  { %v957_v47 = vpop.f32.mrb[8].mxu1 }
0x1482   :  { %v961_v48 = vadd.f32 %v957_v47, %v168_v46  ;;  %v1272_v49 = vpop.f32.mrb[9].mxu1 }
0x1484   :  { %v1111_v50 = vmul.f32 -1.442695, %v961_v48 }
0x1486   :  { %1404 = vpow2.f32 %v1111_v50 }
0x1487   :  { %1406 = vtanh.f32 %v961_v48 }
0x1490   :  { %v1405_v51 = vpop.eup %1404 }
0x1491   :  { %v966_v52 = vadd.f32 1.0, %v1405_v51  ;;  %v1407_v53 = vpop.eup %1406 }
0x1493   :  { %1408 = vrcp.f32 %v966_v52 }
0x149d   :  { %v1409_v54 = vpop.eup %1408 }
0x149e   :  { %v969_v55 = vsel %vm1532_vm4, %v1407_v53, %v1409_v54 }
0x149f   :  { %972 = vrot.lane.b32.xlu0 %v969_v55, %s1439_s3  ;;  %v970_v13 = vmul.f32 %v969_v55, %v879_v41 }
0x1511   :  { %v973_v56 = vpop.permute.xlu0 %972 }
0x1512   :  { %v975_v57 = vmul.f32 %v973_v56, %v969_v55 }
0x1514   :  { %977 = vrot.lane.b32.xlu1 %v975_v57, %s1440_s13 }
0x1586   :  { %v978_v2 = vpop.permute.xlu1 %977 }
0x1587   :  { %v980_v58 = vadd.f32 %v978_v2, %v970_v13 }
0x1589   :  { %1410 = vtanh.f32 %v980_v58 }
0x1593   :  { %v1411_v1 = vpop.eup %1410 }
0x1594   :  { %983 = vrot.lane.b32.xlu0 %v1411_v1, %s1439_s3 }
0x1606   :  { %v984_v5 = vpop.permute.xlu0 %983 }
0x1607   :  { %v986_v6 = vmul.f32 %v984_v5, %v969_v55 }
0x1609   :  { %999 = vrot.lane.b32.xlu1 %v986_v6, %s1440_s13 }
0x167b   :  { %v1000_v8 = vpop.permute.xlu1 %999 }
0x167c   :  { %1282 = vmatmul.mubr.msk.f32.vlgmr.msra.gmra.mrb[14].mxu0 %vm180_vm5, %v1000_v8 }
0x174f   :  { %v1069_v11 = vpop.f32.mrb[14].mxu0 }
0x1750   :  { %v1070_v14 = vadd.f32 %v1112_v9, %v1069_v11  ;;  %v1283_v3 = vpop.f32.mrb[15].mxu0 }
0x1752   :  { %1073 = vst [vmem:[#allocation2] sm:$0xff] %v1070_v14 }
0x1753   :  { %1423 = shalt.err (!%p1420_p4)
}
0x1754   :  { %s1424_s3 = scalar_lea.hbm %s1702_s6, 128 }
0x1755   :  { %p1425_p5 = scmp.ne.s32.totalorder %s1702_s6, %s1424_s3  ;;  %p1428_p6 = scmp.lt.u32.totalorder %s1424_s3, %s1702_s6 }
0x1757   :  { %p1430_p7 = pnand %p1428_p6, %p1425_p5 }
0x1759   :  { %1433 = shalt.err (!%p1430_p7)
}
0x175a   :  { %1083 = dma.vmem_to_hbm [thread:$0]  %s1081_s10, 128, %s1702_s6, [#allocation3]  }
0x175b   :  { %1434 = dma.done.wait [#allocation3], 128  }
0x175c   :  { %1435 = vsyncadd [#allocation3], 4294967168 }
0x175d   :  { %1087 = vsyncpa [#allocation3], 1 }

</bundles_post_ra>
